<compile_context>
chip_gen: v7x
topology: tpu7x:2x2x1
jax: 0.10.0
libtpu: 0.0.40
codegen_flags: <defaults>
</compile_context>

<pallas_src>
import jax
import jax.numpy as jnp
from jax import lax
from jax.experimental import pallas as pl
from jax.experimental.pallas import tpu as pltpu


def self_attention_kernel(xk_ref, y_ref, v_ref, xres_ref, out_ref, attn_ref):
    xk = xk_ref[0]          # (c_aug, N)  bf16  augmented keys  (X_aug)
    y = y_ref[0]            # (c_aug, TQ) bf16  query pre-projection tile (Wqk_aug^T X_aug)
    v = v_ref[0]            # (C, N)      bf16  gamma-scaled value projection

    # energy[i, j] = Y[:, i] . X_aug[:, j]   -> (TQ, N), bf16 MXU, f32 accumulation.
    energy = lax.dot_general(y, xk, (((0,), (0,)), ((), ())),
                             preferred_element_type=jnp.float32)

    # Row softmax (torch.softmax(energy, dim=-1)); elementwise math in f32.
    emax = jnp.max(energy, axis=-1, keepdims=True)
    e = jnp.exp(energy - emax)
    attn = e * pl.reciprocal(jnp.sum(e, axis=-1, keepdims=True), approx=True)

    # Single bf16 cast shared by the HBM store and the PV matmul.
    attn_b = attn.astype(jnp.bfloat16)
    attn_ref[0] = attn_b

    # out[c, i] = sum_j V[c, j] * attn[i, j]   (== torch bmm(v, attn^T)); bf16 MXU.
    out = lax.dot_general(v, attn_b, (((1,), (1,)), ((), ())),
                          preferred_element_type=jnp.float32)        # (C, TQ)

    out_ref[0] = (out + xres_ref[0]).astype(out_ref.dtype)           # residual (gamma folded into V)


def _pick_q_tile(n, q_tile):
    # Largest multiple of 128 that divides n and is <= q_tile; otherwise single tile.
    t = (q_tile // 128) * 128
    while t >= 128:
        if n % t == 0:
            return t
        t -= 128
    return n


def self_attention(x_nchw, wq, bq, wk, bk, wv, bv, gamma, *, q_tile=128):
    """SelfAttention forward.

    x_nchw : (B, C, W, H) float32
    wq, wk : (C//8, C)  == torch conv weight[:, :, 0, 0]
    wv     : (C, C)
    bq, bk : (C//8,), bv: (C,), gamma: scalar
    Returns (out (B, C, W, H) float32, attention (B, N, N) bfloat16), N = W*H.
    """
    B, C, W, H = x_nchw.shape
    N = W * H
    dt = x_nchw.dtype

    # ---- wrapper-side parameter fusion (tiny) --------------------------------
    # energy[i,j] = (Wq x_i + bq).(Wk x_j + bk) = [x_i;1]^T Wqk_aug [x_j;1]
    c_aug = ((C + 1 + 7) // 8) * 8             # C channels + ones row, padded to sublane 8
    wqk = wq.T @ wk                            # (C, C)
    u = wq.T @ bk                              # (C,)  row-dependent bias term
    w_ = wk.T @ bq                             # (C,)  column-dependent bias term
    s = bq @ bk                                # ()    constant term
    wqk_aug = jnp.zeros((c_aug, c_aug), jnp.float32)
    wqk_aug = (wqk_aug.at[:C, :C].set(wqk)
                      .at[:C, C].set(u)
                      .at[C, :C].set(w_)
                      .at[C, C].set(s))

    # Channel-major x (row-major flatten matches torch's .view); no HBM transpose.
    x_bcn = x_nchw.reshape(B, C, N).astype(jnp.float32)
    x_aug = jnp.concatenate(
        [x_bcn, jnp.ones((B, 1, N), jnp.float32),
         jnp.zeros((B, c_aug - C - 1, N), jnp.float32)], axis=1)      # (B, c_aug, N)

    # Hoisted q-independent projections (plain XLA matmuls), pre-cast to bf16.
    y_bdn = jnp.einsum('cd,bcn->bdn', wqk_aug, x_aug)                 # Y = Wqk_aug^T X_aug
    v_bcn = jnp.einsum('oc,bcn->bon', wv, x_bcn) + bv[None, :, None]  # value 1x1 conv
    v_bcn = gamma * v_bcn                                             # fold gamma into V

    xk_b = x_aug.astype(jnp.bfloat16)                                 # keys, bf16
    y_b = y_bdn.astype(jnp.bfloat16)
    v_b = v_bcn.astype(jnp.bfloat16)

    tq = _pick_q_tile(N, q_tile)
    nq = N // tq

    flops = 2 * B * (N * N * c_aug              # energy
                     + C * N * N)               # attn @ V
    cost = pl.CostEstimate(
        flops=flops,
        transcendentals=B * N * N,
        bytes_accessed=(2 * B * c_aug * N       # keys (bf16)
                        + 2 * B * c_aug * N     # Y (bf16)
                        + 2 * B * C * N         # V (bf16)
                        + 4 * B * C * N         # residual (f32)
                        + 4 * B * C * N         # out (f32)
                        + 2 * B * N * N))       # attention map (bf16)

    # Per-step VMEM working set estimate (double buffers + f32 temps), used to set
    # an explicit scoped-VMEM limit; clamped to 64 MiB so it is safe on v7x.
    step_bytes = (2 * c_aug * N * 2             # keys bf16 (x2 buffers)
                  + 2 * 2 * c_aug * tq * 2      # Y tile bf16
                  + 2 * 2 * C * N               # V bf16
                  + 2 * 2 * 4 * C * tq          # residual f32 + out f32
                  + 2 * 2 * tq * N              # attn bf16 output
                  + 3 * 4 * tq * N)             # f32 temps (energy, exp, headroom)
    vmem_limit = int(min(64 * 1024 * 1024, max(32 * 1024 * 1024, 2 * step_bytes)))

    out_bcn, attn = pl.pallas_call(
        self_attention_kernel,
        out_shape=(jax.ShapeDtypeStruct((B, C, N), dt),
                   jax.ShapeDtypeStruct((B, N, N), jnp.bfloat16)),
        grid=(B, nq),
        in_specs=[
            # NOTE: keys/V block indices are constant along q, so Pallas only
            # re-DMAs them at batch boundaries.  (pipeline_mode=pl.Buffered(1)
            # could single-buffer them to save VMEM on v7x.)
            pl.BlockSpec((1, c_aug, N), lambda b, q: (b, 0, 0)),      # keys X_aug (bf16)
            pl.BlockSpec((1, c_aug, tq), lambda b, q: (b, 0, q)),     # Y tile (bf16)
            pl.BlockSpec((1, C, N), lambda b, q: (b, 0, 0)),          # gamma*V (bf16)
            pl.BlockSpec((1, C, tq), lambda b, q: (b, 0, q)),         # residual x (f32)
        ],
        out_specs=(
            pl.BlockSpec((1, C, tq), lambda b, q: (b, 0, q)),         # out (B, C, N)
            pl.BlockSpec((1, tq, N), lambda b, q: (b, q, 0)),         # attention (B, N, N)
        ),
        compiler_params=pltpu.CompilerParams(
            dimension_semantics=("parallel", "parallel"),
            vmem_limit_bytes=vmem_limit),
        cost_estimate=cost,
    )(xk_b, y_b, v_b, x_bcn)

    return out_bcn.reshape(B, C, W, H), attn


def reference(x, wq, bq, wk, bk, wv, bv, gamma):
    """Pure-JAX f32 reference mirroring the torch forward."""
    B, C, W, H = x.shape
    N = W * H
    xf = x.reshape(B, C, N).astype(jnp.float32)
    q = jnp.einsum('oc,bcn->bon', wq, xf) + bq[None, :, None]
    k = jnp.einsum('oc,bcn->bon', wk, xf) + bk[None, :, None]
    v = jnp.einsum('oc,bcn->bon', wv, xf) + bv[None, :, None]
    energy = jnp.einsum('bci,bcj->bij', q, k)
    attn = jax.nn.softmax(energy, axis=-1)
    out = jnp.einsum('bcj,bij->bci', v, attn)
    out = gamma * out + xf
    return out.reshape(B, C, W, H), attn


if __name__ == "__main__":
    key = jax.random.PRNGKey(0)
    B, C, W, H = 2, 16, 16, 16            # in_dim = 16 -> query/key channels = 2
    Cq = C // 8
    ks = jax.random.split(key, 7)

    x = jax.random.normal(ks[0], (B, C, W, H), jnp.float32)
    # Torch-layout weights: conv weight[:, :, 0, 0] is (out_channels, in_channels).
    wq = jax.random.normal(ks[1], (Cq, C), jnp.float32) * 0.1
    wk = jax.random.normal(ks[2], (Cq, C), jnp.float32) * 0.1
    wv = jax.random.normal(ks[3], (C, C), jnp.float32) * 0.1
    bq = jax.random.normal(ks[4], (Cq,), jnp.float32) * 0.1
    bk = jax.random.normal(ks[5], (Cq,), jnp.float32) * 0.1
    bv = jax.random.normal(ks[6], (C,), jnp.float32) * 0.1
    # Module init is gamma = 0 (out == x); use a nonzero value to exercise the path.
    gamma = jnp.float32(0.5)

    fn = jax.jit(self_attention)
    out, attn = fn(x, wq, bq, wk, bk, wv, bv, gamma)
    jax.block_until_ready((out, attn))

    ref_out, ref_attn = reference(x, wq, bq, wk, bk, wv, bv, gamma)
    assert out.shape == (B, C, W, H) and attn.shape == (B, W * H, W * H)
    assert attn.dtype == jnp.bfloat16
    assert jnp.allclose(attn.astype(jnp.float32), ref_attn, atol=1e-2, rtol=1e-2)
    assert jnp.allclose(out, ref_out, atol=1e-2, rtol=1e-2)
    print("KERNEL_OK")
</pallas_src>

<mosaic_0001>
module attributes {stable_mosaic.version = 11 : i64} {
  func.func @self_attention_kernel(%arg0: i32, %arg1: i32, %arg2: memref<1x24x256xbf16, #tpu.memory_space<vmem>>, %arg3: memref<1x24x128xbf16, #tpu.memory_space<vmem>>, %arg4: memref<1x16x256xbf16, #tpu.memory_space<vmem>>, %arg5: memref<1x16x128xf32, #tpu.memory_space<vmem>>, %arg6: memref<1x16x128xf32, #tpu.memory_space<vmem>>, %arg7: memref<1x128x256xbf16, #tpu.memory_space<vmem>>) attributes {dimension_semantics = [#tpu.dimension_semantics<parallel>, #tpu.dimension_semantics<parallel>], iteration_bounds = array<i64: 2, 2>, scalar_prefetch = 0 : i64, scratch_operands = 0 : i64, tpu.core_type = #tpu.core_type<tc>, window_params = [{transform_indices = @transform_0, window_bounds = array<i64: 1, 24, 256>}, {transform_indices = @transform_1, window_bounds = array<i64: 1, 24, 128>}, {transform_indices = @transform_2, window_bounds = array<i64: 1, 16, 256>}, {transform_indices = @transform_3, window_bounds = array<i64: 1, 16, 128>}, {transform_indices = @transform_4, window_bounds = array<i64: 1, 16, 128>}, {transform_indices = @transform_5, window_bounds = array<i64: 1, 128, 256>}]} {
    %c0 = arith.constant 0 : index
    %c0_0 = arith.constant 0 : index
    %c0_1 = arith.constant 0 : index
    %0 = vector.load %arg2[%c0, %c0_0, %c0_1] : memref<1x24x256xbf16, #tpu.memory_space<vmem>>, vector<1x24x256xbf16>
    %1 = vector.shape_cast %0 : vector<1x24x256xbf16> to vector<24x256xbf16>
    %c0_2 = arith.constant 0 : index
    %c0_3 = arith.constant 0 : index
    %c0_4 = arith.constant 0 : index
    %2 = vector.load %arg3[%c0_2, %c0_3, %c0_4] : memref<1x24x128xbf16, #tpu.memory_space<vmem>>, vector<1x24x128xbf16>
    %3 = vector.shape_cast %2 : vector<1x24x128xbf16> to vector<24x128xbf16>
    %c0_5 = arith.constant 0 : index
    %c0_6 = arith.constant 0 : index
    %c0_7 = arith.constant 0 : index
    %4 = vector.load %arg4[%c0_5, %c0_6, %c0_7] : memref<1x16x256xbf16, #tpu.memory_space<vmem>>, vector<1x16x256xbf16>
    %5 = vector.shape_cast %4 : vector<1x16x256xbf16> to vector<16x256xbf16>
    %cst = arith.constant dense<0.000000e+00> : vector<128x256xf32>
    %6 = tpu.matmul %3, %1, %cst {dimension_numbers = #tpu.dot_dimension_numbers<[0], [0], [1], [1], [0, 1, 1, 1], [], []>} : vector<24x128xbf16>, vector<24x256xbf16>, vector<128x256xf32> -> vector<128x256xf32>
    %cst_8 = arith.constant dense<0xFF800000> : vector<128xf32>
    %7 = vector.multi_reduction <maximumf>, %6, %cst_8 [1] : vector<128x256xf32> to vector<128xf32>
    %8 = vector.shape_cast %7 : vector<128xf32> to vector<128x1xf32>
    %9 = vector.broadcast %8 : vector<128x1xf32> to vector<128x256xf32>
    %10 = arith.subf %6, %9 : vector<128x256xf32>
    %11 = math.exp %10 : vector<128x256xf32>
    %cst_9 = arith.constant dense<0.000000e+00> : vector<128xf32>
    %12 = vector.multi_reduction <add>, %11, %cst_9 [1] : vector<128x256xf32> to vector<128xf32>
    %13 = vector.shape_cast %12 : vector<128xf32> to vector<128x1xf32>
    %14 = tpu.reciprocal %13 {approx = true} : vector<128x1xf32> -> vector<128x1xf32>
    %15 = vector.broadcast %14 : vector<128x1xf32> to vector<128x256xf32>
    %16 = arith.mulf %11, %15 : vector<128x256xf32>
    %17 = arith.truncf %16 : vector<128x256xf32> to vector<128x256xbf16>
    %c0_10 = arith.constant 0 : index
    %c0_11 = arith.constant 0 : index
    %c0_12 = arith.constant 0 : index
    %18 = vector.load %arg7[%c0_10, %c0_11, %c0_12] : memref<1x128x256xbf16, #tpu.memory_space<vmem>>, vector<1x128x256xbf16>
    %19 = vector.shape_cast %18 : vector<1x128x256xbf16> to vector<128x256xbf16>
    %20 = vector.shape_cast %17 : vector<128x256xbf16> to vector<1x128x256xbf16>
    tpu.vector_store %arg7[%c0_10, %c0_11, %c0_12], %20 {strides = array<i32>} : memref<1x128x256xbf16, #tpu.memory_space<vmem>>, vector<1x128x256xbf16>,
    %cst_13 = arith.constant dense<0.000000e+00> : vector<16x128xf32>
    %21 = tpu.matmul %5, %17, %cst_13 {dimension_numbers = #tpu.dot_dimension_numbers<[1], [1], [0], [0], [0, 0, 1, 0], [], []>} : vector<16x256xbf16>, vector<128x256xbf16>, vector<16x128xf32> -> vector<16x128xf32>
    %c0_14 = arith.constant 0 : index
    %c0_15 = arith.constant 0 : index
    %c0_16 = arith.constant 0 : index
    %22 = vector.load %arg5[%c0_14, %c0_15, %c0_16] : memref<1x16x128xf32, #tpu.memory_space<vmem>>, vector<1x16x128xf32>
    %23 = vector.shape_cast %22 : vector<1x16x128xf32> to vector<16x128xf32>
    %24 = arith.addf %21, %23 : vector<16x128xf32>
    %c0_17 = arith.constant 0 : index
    %c0_18 = arith.constant 0 : index
    %c0_19 = arith.constant 0 : index
    %25 = vector.load %arg6[%c0_17, %c0_18, %c0_19] : memref<1x16x128xf32, #tpu.memory_space<vmem>>, vector<1x16x128xf32>
    %26 = vector.shape_cast %25 : vector<1x16x128xf32> to vector<16x128xf32>
    %27 = vector.shape_cast %24 : vector<16x128xf32> to vector<1x16x128xf32>
    tpu.vector_store %arg6[%c0_17, %c0_18, %c0_19], %27 {strides = array<i32>} : memref<1x16x128xf32, #tpu.memory_space<vmem>>, vector<1x16x128xf32>,
    return
  }
  func.func @transform_0(%arg0: i32, %arg1: i32) -> (i32, i32, i32) {
    %c0_i32 = arith.constant 0 : i32
    %c0_i32_0 = arith.constant 0 : i32
    %c0_i32_1 = arith.constant 0 : i32
    return %arg0, %c0_i32, %c0_i32_0 : i32, i32, i32
  }
  func.func @transform_1(%arg0: i32, %arg1: i32) -> (i32, i32, i32) {
    %c0_i32 = arith.constant 0 : i32
    %c0_i32_0 = arith.constant 0 : i32
    return %arg0, %c0_i32, %arg1 : i32, i32, i32
  }
  func.func @transform_2(%arg0: i32, %arg1: i32) -> (i32, i32, i32) {
    %c0_i32 = arith.constant 0 : i32
    %c0_i32_0 = arith.constant 0 : i32
    %c0_i32_1 = arith.constant 0 : i32
    return %arg0, %c0_i32, %c0_i32_0 : i32, i32, i32
  }
  func.func @transform_3(%arg0: i32, %arg1: i32) -> (i32, i32, i32) {
    %c0_i32 = arith.constant 0 : i32
    %c0_i32_0 = arith.constant 0 : i32
    return %arg0, %c0_i32, %arg1 : i32, i32, i32
  }
  func.func @transform_4(%arg0: i32, %arg1: i32) -> (i32, i32, i32) {
    %c0_i32 = arith.constant 0 : i32
    %c0_i32_0 = arith.constant 0 : i32
    return %arg0, %c0_i32, %arg1 : i32, i32, i32
  }
  func.func @transform_5(%arg0: i32, %arg1: i32) -> (i32, i32, i32) {
    %c0_i32 = arith.constant 0 : i32
    %c0_i32_0 = arith.constant 0 : i32
    return %arg0, %arg1, %c0_i32 : i32, i32, i32
  }
}

</mosaic_0001>

<bundles_post_ra>
// kernel: self_attention.1
= control target key start
LH: loop header
LB: loop body
LE: loop exit
PB: predicated region body
PF: predicated region fallthrough
CT: control target
= control target key end

     0   :  { %s2082_s0 = inlined_call_operand.vmem [shape: bf16[2,24,256], index: 0, kind: input, shape index: {}]   ;;  %s2083_s1 = inlined_call_operand.vmem [shape: bf16[2,24,256], index: 1, kind: input, shape index: {}]   ;;  %s2084_s2 = inlined_call_operand.vmem [shape: bf16[2,16,256], index: 2, kind: input, shape index: {}]   ;;  %s2085_s3 = inlined_call_operand.vmem [shape: f32[2,16,256], index: 3, kind: input, shape index: {}]   ;;  %s2086_s4 = inlined_call_operand.vmem [shape: f32[2,16,256], index: 4, kind: output, shape index: {0}]   ;;  %s2087_s5 = inlined_call_operand.hbm [shape: bf16[2,256,256], index: 5, kind: output, shape index: {1}]  }
   0x1   :  { %2088 = sst [smem:[#allocation8_spill]] %s2082_s0 }
   0x2   :  { %2089 = sst [smem:[#allocation9_spill]] %s2083_s1 }
   0x3   :  { %11 = vsyncpa [#allocation6], 0 }
   0x4   :  { %13 = vsyncpa [#allocation6 + $0x1], 0  ;;  %s1616_s18 = smov 0   ;;  %s1618_s19 = smov 0  }
   0x5   :  { %s1620_s20 = smov 0   ;;  %s1622_s21 = smov 0  }
   0x6   :  { %s1624_s22 = smov 0   ;;  %s1626_s23 = smov 0  }
   0x7   :  { %s1628_s24 = smov 0   ;;  %s1630_s25 = smov 0  }
   0x8 LB: > { %s1226_s26 = sadd.s32 4294967295, %s1580_s25   ;;  %s1227_s27 = sadd.s32 4294967294, %s1580_s25   ;;  %s1580_s25 = sphi %s1630_s25, %s19_s25   ;;  %s1576_s24 = sphi %s1628_s24, %s2102_s24   ;;  %s1572_s23 = sphi %s1626_s23, %s2101_s23   ;;  %s1568_s22 = sphi %s1624_s22, %s2100_s22   ;;  %s1564_s21 = sphi %s1622_s21, %s2099_s21   ;;  %s1560_s20 = sphi %s1620_s20, %s2098_s20   ;;  %s1556_s19 = sphi %s1618_s19, %s2097_s19   ;;  %s1552_s18 = sphi %s1616_s18, %s2096_s18  }
   0x9   : > { %s28_s28 = sadd.s32 1, %s1572_s23  ;;  %s31_s29 = sadd.s32 1, %s1576_s24 }
   0xa   : > { %p29_p0 = scmp.ge.s32.totalorder %s28_s28, 2  ;;  %p73_p1 = scmp.ne.s32.totalorder %s1560_s20, %s1556_s19 }
   0xb   : > { %p74_p2 = scmp.eq.s32.totalorder %s1580_s25, 0  ;;  %p159_p5 = scmp.eq.s32.totalorder %s1226_s26, 3 }
   0xc   : > { %s2104_s28 = smov (%p29_p0, %s28_s28), 0  ;;  %s2106_s29 = smov (!%p29_p0, %s31_s29), %s1576_s24 }
   0xd   : > { %s62_s30 = ssub.s32 %s1572_s23, %s2104_s28  ;;  %p1668_p3 = por %p74_p2, %p73_p1 }
   0xe   : > { %p33_p4 = scmp.ge.s32.totalorder %s2106_s29, 2  ;;  %p192_p6 = scmp.ne.s32.totalorder %s1556_s19, %s1552_s18 }
   0xf   : > { %p193_p7 = scmp.eq.s32.totalorder %s1227_s27, 3  ;;  %p1676_p8 = por %p159_p5, %p73_p1 }
  0x10   : > { %s2108_s29 = smov (%p33_p4, %s2106_s29), 0  ;;  %s66_s11 = sadd.s32 1, %s1560_s20 }
  0x11   : > { %p1680_p9 = por %p193_p7, %p192_p6  ;;  %s61_s9 = ssub.s32 %s1576_s24, %s2108_s29 }
  0x12   : > { %s63_s10 = sor.u32 %s62_s30, %s61_s9  ;;  %p1229_p11 = scmp.ge.s32.totalorder %s1580_s25, 4 }
  0x13   : > { %p64_p10 = scmp.eq.s32.totalorder %s63_s10, 0 }
  0x14   : > { %209 = sbr.rel (%p1229_p11) target bundleno = 45 (0x2d), region = 16 }
  0x15   : > { %s1688_s12 = scalar_select %p64_p10, %s1560_s20, %s66_s11  }
  0x1b   : > { %220 = sbr.rel (!%p1668_p3) target bundleno = 38 (0x26), region = 24  ;;  %s222_s13 = sand.u32 (%p1668_p3), 1, %s1560_s20  }
  0x1c   : > { %s1303_s14 = smul.u32 (%p1668_p3), 6, %s1576_s24  ;;  %s2093_s1 = sld [smem:[#allocation9_spill]] (%p1668_p3) }
  0x1d   : > { %s1302_s15 = smul.u32 (%p1668_p3), 12, %s222_s13 }
  0x1e   : > { %s226_s16 = sadd.s32 (%p1668_p3), %s1572_s23, %s1303_s14 }
  0x1f   : > { %s1230_s17 = sshll.u32 (%p1668_p3), %s226_s16, 2  ;;  %s224_s9 = scalar_lea.vmem (%p1668_p3), [#allocation2], %s1302_s15 }
  0x22   : > { %s228_s30 = scalar_lea.vmem %s2093_s1, %s1230_s17 }
  0x23   : > { %v244_v0 = vld [vmem:[%s228_s30] sm:$0xf]  ;;  %v246_v1 = vld [vmem:[%s228_s30 + $0x8] sm:$0xf]  ;;  %v248_v2 = vld [vmem:[%s228_s30 + $0x10] sm:$0xf] }
  0x24   : > { %245 = vst [vmem:[%s224_s9] sm:$0xf] %v244_v0  ;;  %247 = vst [vmem:[%s224_s9 + $0x4] sm:$0xf] %v246_v1 }
  0x25   : > { %249 = vst [vmem:[%s224_s9 + $0x8] sm:$0xf] %v248_v2 }
  0x26 PF: > { %286 = sbr.rel (!%p1668_p3) target bundleno = 45 (0x2d), region = 69  ;;  %s288_s10 = sand.u32 (%p1668_p3), 1, %s1560_s20  }
  0x27   : > { %s1232_s11 = sshll.u32 (%p1668_p3), %s1576_s24, 2  ;;  %s1231_s13 = sshll.u32 (%p1668_p3), %s288_s10, 4 }
  0x28   : > { %s292_s14 = sadd.s32 (%p1668_p3), %s1572_s23, %s1232_s11  ;;  %s290_s15 = scalar_lea.vmem (%p1668_p3), [#allocation3], %s1231_s13 }
  0x29   : > { %s1233_s16 = sshll.u32 (%p1668_p3), %s292_s14, 3 }
  0x2a   : > { %s294_s27 = scalar_lea.vmem (%p1668_p3), %s2085_s3, %s1233_s16 }
  0x2b   : > { %v324_v3 = vld [vmem:[%s294_s27] sm:$0xff] (%p1668_p3)  ;;  %v326_v4 = vld [vmem:[%s294_s27 + $0x10] sm:$0xff] (%p1668_p3) }
  0x2c   : > { %325 = vst [vmem:[%s290_s15] sm:$0xff] (%p1668_p3), %v324_v3  ;;  %327 = vst [vmem:[%s290_s15 + $0x8] sm:$0xff] (%p1668_p3), %v326_v4 }
  0x2d PF: > { %p1234_p12 = scmp.ge.s32.totalorder %s1580_s25, 1  ;;  %p332_p13 = scmp.lt.s32.totalorder %s1580_s25, 5 }
  0x2f   : > { %p333_p0 = pnand %p1234_p12, %p332_p13 }
  0x30   : > { %s1710_s6 = sand.u32 (!%p333_p0), 1, %s1556_s19   ;;  %p391_p1 = scmp.lt.s32.totalorder (!%p333_p0), %s1568_s22, 1  ;;  %v1582_v5 = vmov (!%p333_p0), 0   ;;  %vm477_vm0 = vcmask (!%p333_p0), 1043456   ;;  %vm452_vm1 = vcmask (!%p333_p0), 195584  }
  0x31   : > { %336 = sbr.rel (%p333_p0) target bundleno = 1010 (0x3f2), region = 107  ;;  %516 = vmatprep.mubr.bf16.mxu0 (!%p333_p0), %v1582_v5  ;;  %s2094_s0 = sld [smem:[#allocation8_spill]] (!%p333_p0) }
  0x32   : > { %s1304_s30 = smul.u32 (!%p333_p0), 12, %s1710_s6 }
  0x34   : > { %s341_s9 = scalar_lea.vmem (!%p333_p0), [#allocation2], %s1304_s30  ;;  %s1237_s30 = sshll.u32 (!%p333_p0), %s1710_s6, 7 }
  0x35   : > { %v1380_v6 = vld [vmem:[%s341_s9] sm:$0xff] (!%p333_p0)   ;;  %v1381_v7 = vld [vmem:[%s341_s9 + $0x8] ss:$0 sps:$4 sm:$0xff] (!%p333_p0)   ;;  %s1965_s9 = scalar_lea.vmem (!%p333_p0), [#allocation5], %s1237_s30 }
  0x36   : > { %421 = vxpose.xlu0.c.b16.start [1/2] (short) (!%p333_p0), %v1380_v6, 128 }
  0x38   : > { %s1715_s10 = scalar_select %p391_p1, %s1568_s22, 1 }
  0x3a   : > { %s1305_s11 = smul.u32 24, %s1715_s10  ;;  %422 = vxpose.xlu0.c.b16.end [2/2] (short) %v1381_v7, 128  ;;  %s1284_s17 = sshll.u32 %s1715_s10, 4 }
  0x3b   : > { %s1957_s15 = scalar_lea.vmem %s2084_s2, %s1284_s17  ;;  %s1235_s10 = sshll.u32 %s1710_s6, 4 }
  0x3c   : > { %s395_s16 = scalar_lea.vmem %s2094_s0, %s1305_s11  ;;  %s348_s11 = scalar_lea.vmem [#allocation3], %s1235_s10 }
  0x3d   : > { %v405_v8 = vld [vmem:[%s395_s16 + $0x10] sm:$0xff]  ;;  %v1382_v9 = vld [vmem:[%s395_s16 + $0x4] ss:$8 sps:$4 sm:$0xff]   ;;  %v1385_v11 = vld [vmem:[%s395_s16] ss:$8 sps:$4 sm:$0xff]   ;;  %s383_s13 = scalar_lea.vmem [#allocation4], %s1235_s10 }
  0x3e   : > { %v1246_v10 = vcombine.high %v405_v8, %v405_v8  ;;  %v1245_v12 = vcombine.low %v405_v8, %v405_v8  ;;  %484 = vmatprep.subr.bf16.mxu0 %v1382_v9  ;;  %s1276_s16 = sshll.u32 (%p1676_p8), %s1568_s22, 2 }
  0x3f   : > { %485 = vmatpush1.bf16.msra.mxu0 %v1385_v11  ;;  %s1017_s17 = sadd.s32 (%p1676_p8), %s1564_s21, %s1276_s16 }
  0x40   : > { %1247 = vmatprep.subr.msk.bf16.mxu0 %vm477_vm0, %v1246_v10  ;;  %v479_v13 = vsel %vm477_vm0, %v1245_v12, 0  ;;  %s1277_s26 = sshll.u32 (%p1676_p8), %s1017_s17, 3 }
  0x41   : > { %s1019_s30 = scalar_lea.vmem (%p1676_p8), %s2086_s4, %s1277_s26 }
  0x43   : > { %487 = vmatpush1.bf16.msra.mxu0 %v479_v13 }
  0x9c   : > { %v429_v14 = vpop.trf.xlu0 }
  0x9d   : > { %1248 = vmatmul.mubr.msk.bf16.vlgmr.msra.gmra.mrb[0].mxu0 %vm452_vm1, %v429_v14 }
  0x9e   : > { %526 = vmatprep.mubr.bf16.mxu0 %v1582_v5 }
  0xa0   : > { %v430_v15 = vpop.trf.xlu0 }
  0xa4   : > { %v431_v16 = vpop.trf.xlu0 }
  0xa5   : > { %1249 = vmatmul.mubr.msk.bf16.gmra.mrb[4].mxu0 %vm452_vm1, %v430_v15 }
  0xa6   : > { %536 = vmatprep.mubr.bf16.mxu0 %v1582_v5 }
  0xa8   : > { %v432_v17 = vpop.trf.xlu0 }
  0xac   : > { %v433_v18 = vpop.trf.xlu0 }
  0xad   : > { %1250 = vmatmul.mubr.msk.bf16.gmra.mrb[8].mxu0 %vm452_vm1, %v431_v16 }
  0xae   : > { %546 = vmatprep.mubr.bf16.mxu0 %v1582_v5 }
  0xb0   : > { %v434_v19 = vpop.trf.xlu0 }
  0xb4   : > { %v435_v20 = vpop.trf.xlu0 }
  0xb5   : > { %1251 = vmatmul.mubr.msk.bf16.gmra.mrb[12].mxu0 %vm452_vm1, %v432_v17 }
  0xb6   : > { %556 = vmatprep.mubr.bf16.mxu0 %v1582_v5 }
  0xb8   : > { %v436_v21 = vpop.trf.xlu0 }
  0xbd   : > { %1252 = vmatmul.mubr.msk.bf16.gmra.mrb[16].mxu0 %vm452_vm1, %v433_v18 }
  0xbe   : > { %566 = vmatprep.mubr.bf16.mxu0 %v1582_v5 }
  0xc5   : > { %1253 = vmatmul.mubr.msk.bf16.gmra.mrb[20].mxu0 %vm452_vm1, %v434_v19 }
  0xc6   : > { %576 = vmatprep.mubr.bf16.mxu0 %v1582_v5 }
  0xcd   : > { %1254 = vmatmul.mubr.msk.bf16.gmra.mrb[24].mxu0 %vm452_vm1, %v435_v20 }
  0xce   : > { %586 = vmatprep.mubr.bf16.mxu0 %v1582_v5 }
  0xd5   : > { %1255 = vmatmul.mubr.msk.bf16.gmra.mrb[28].mxu0 %vm452_vm1, %v436_v21 }
 0x170   : > { %v1729_v22 = vpop.f32.mrb[0].mxu0 }
 0x171   : > { %v1731_v23 = vpop.f32.mrb[1].mxu0 }
 0x172   : > { %v1733_v24 = vpop.f32.mrb[2].mxu0  ;;  %v597_v25 = vmax.f32 %v1729_v22, %v1731_v23 }
 0x173   : > { %v1737_v26 = vpop.f32.mrb[3].mxu0 }
 0x174   : > { %598 = vmax.xlane.f32.xlu1 %v597_v25  ;;  %v600_v27 = vmax.f32 %v1733_v24, %v1737_v26 }
 0x178   : > { %601 = vmax.xlane.f32.xlu1 %v600_v27  ;;  %v1741_v28 = vpop.f32.mrb[4].mxu0 }
 0x179   : > { %v1743_v29 = vpop.f32.mrb[5].mxu0 }
 0x17a   : > { %v1745_v30 = vpop.f32.mrb[6].mxu0  ;;  %v603_v31 = vmax.f32 %v1741_v28, %v1743_v29 }
 0x17b   : > { %v1749_v32 = vpop.f32.mrb[7].mxu0 }
 0x17c   : > { %604 = vmax.xlane.f32.xlu0 %v603_v31  ;;  %v606_v33 = vmax.f32 %v1745_v30, %v1749_v32 }
 0x17e   : > { %607 = vmax.xlane.f32.xlu1 %v606_v33 }
 0x180   : > { %v1753_v34 = vpop.f32.mrb[8].mxu0 }
 0x181   : > { %v1755_v35 = vpop.f32.mrb[9].mxu0 }
 0x182   : > { %v1757_v36 = vpop.f32.mrb[10].mxu0  ;;  %v609_v37 = vmax.f32 %v1753_v34, %v1755_v35 }
 0x183   : > { %v1761_v38 = vpop.f32.mrb[11].mxu0 }
 0x184   : > { %610 = vmax.xlane.f32.xlu1 %v609_v37  ;;  %v612_v39 = vmax.f32 %v1757_v36, %v1761_v38 }
 0x188   : > { %613 = vmax.xlane.f32.xlu1 %v612_v39  ;;  %v1765_v40 = vpop.f32.mrb[12].mxu0 }
 0x189   : > { %v1767_v41 = vpop.f32.mrb[13].mxu0 }
 0x18a   : > { %v1769_v42 = vpop.f32.mrb[14].mxu0  ;;  %v615_v43 = vmax.f32 %v1765_v40, %v1767_v41 }
 0x18b   : > { %v1773_v44 = vpop.f32.mrb[15].mxu0 }
 0x18c   : > { %616 = vmax.xlane.f32.xlu1 %v615_v43  ;;  %v618_v45 = vmax.f32 %v1769_v42, %v1773_v44 }
 0x190   : > { %619 = vmax.xlane.f32.xlu1 %v618_v45  ;;  %v1777_v46 = vpop.f32.mrb[16].mxu0 }
 0x191   : > { %v1779_v47 = vpop.f32.mrb[17].mxu0 }
 0x192   : > { %v1781_v48 = vpop.f32.mrb[18].mxu0  ;;  %v621_v49 = vmax.f32 %v1777_v46, %v1779_v47 }
 0x193   : > { %v1785_v50 = vpop.f32.mrb[19].mxu0 }
 0x194   : > { %622 = vmax.xlane.f32.xlu1 %v621_v49  ;;  %v624_v51 = vmax.f32 %v1781_v48, %v1785_v50 }
 0x198   : > { %625 = vmax.xlane.f32.xlu1 %v624_v51  ;;  %v1789_v52 = vpop.f32.mrb[20].mxu0 }
 0x199   : > { %v1791_v53 = vpop.f32.mrb[21].mxu0 }
 0x19a   : > { %v1793_v54 = vpop.f32.mrb[22].mxu0  ;;  %v627_v55 = vmax.f32 %v1789_v52, %v1791_v53 }
 0x19b   : > { %v1797_v56 = vpop.f32.mrb[23].mxu0 }
 0x19c   : > { %628 = vmax.xlane.f32.xlu1 %v627_v55  ;;  %v630_v57 = vmax.f32 %v1793_v54, %v1797_v56 }
 0x1a0   : > { %631 = vmax.xlane.f32.xlu1 %v630_v57  ;;  %v1801_v58 = vpop.f32.mrb[24].mxu0 }
 0x1a1   : > { %v1803_v59 = vpop.f32.mrb[25].mxu0 }
 0x1a2   : > { %v1805_v60 = vpop.f32.mrb[26].mxu0  ;;  %v633_v61 = vmax.f32 %v1801_v58, %v1803_v59 }
 0x1a3   : > { %v1809_v62 = vpop.f32.mrb[27].mxu0 }
 0x1a4   : > { %634 = vmax.xlane.f32.xlu1 %v633_v61  ;;  %v636_v63 = vmax.f32 %v1805_v60, %v1809_v62 }
 0x1a6   : > { %637 = vmax.xlane.f32.xlu0 %v636_v63 }
 0x1a8   : > { %v1813_v0 = vpop.f32.mrb[28].mxu0 }
 0x1a9   : > { %v1815_v1 = vpop.f32.mrb[29].mxu0 }
 0x1aa   : > { %v1817_v2 = vpop.f32.mrb[30].mxu0  ;;  %v639_v3 = vmax.f32 %v1813_v0, %v1815_v1 }
 0x1ab   : > { %v1821_v4 = vpop.f32.mrb[31].mxu0 }
 0x1ac   : > { %v642_v5 = vmax.f32 %v1817_v2, %v1821_v4  ;;  %640 = vmax.xlane.f32.xlu1 %v639_v3 }
 0x1ae   : > { %643 = vmax.xlane.f32.xlu0 %v642_v5 }
 0x201   : > { %v599_v6 = vpop.xlane.xlu1 %598 }
 0x202   : > { %v645_v7 = vsub.f32 %v1729_v22, %v599_v6  ;;  %v646_v8 = vsub.f32 %v1731_v23, %v599_v6 }
 0x204   : > { %v677_v9 = vmul.f32 1.442695, %v645_v7  ;;  %v679_v10 = vmul.f32 1.442695, %v646_v8 }
 0x205   : > { %v602_v11 = vpop.xlane.xlu1 %601 }
 0x206   : > { %1390 = vpow2.f32 %v677_v9  ;;  %v647_v12 = vsub.f32 %v1733_v24, %v602_v11  ;;  %v648_v13 = vsub.f32 %v1737_v26, %v602_v11 }
 0x207   : > { %1392 = vpow2.f32 %v679_v10 }
 0x208   : > { %v681_v14 = vmul.f32 1.442695, %v647_v12  ;;  %v683_v15 = vmul.f32 1.442695, %v648_v13 }
 0x209   : > { %v605_v16 = vpop.xlane.xlu0 %604 }
 0x20a   : > { %1394 = vpow2.f32 %v681_v14  ;;  %v649_v17 = vsub.f32 %v1741_v28, %v605_v16  ;;  %v650_v18 = vsub.f32 %v1743_v29, %v605_v16 }
 0x20b   : > { %1396 = vpow2.f32 %v683_v15  ;;  %v608_v19 = vpop.xlane.xlu1 %607 }
 0x20c   : > { %v685_v20 = vmul.f32 1.442695, %v649_v17  ;;  %v687_v21 = vmul.f32 1.442695, %v650_v18  ;;  %v651_v22 = vsub.f32 %v1745_v30, %v608_v19  ;;  %v652_v23 = vsub.f32 %v1749_v32, %v608_v19 }
 0x20e   : > { %1398 = vpow2.f32 %v685_v20  ;;  %v689_v24 = vmul.f32 1.442695, %v651_v22  ;;  %v691_v25 = vmul.f32 1.442695, %v652_v23 }
 0x20f   : > { %1400 = vpow2.f32 %v687_v21 }
 0x210   : > { %v1833_v26 = vpop.eup %1390  ;;  %1402 = vpow2.f32 %v689_v24 }
 0x211   : > { %v1835_v27 = vpop.eup %1392  ;;  %1404 = vpow2.f32 %v691_v25  ;;  %v611_v28 = vpop.xlane.xlu1 %610 }
 0x212   : > { %v653_v29 = vsub.f32 %v1753_v34, %v611_v28  ;;  %v654_v31 = vsub.f32 %v1755_v35, %v611_v28  ;;  %v741_v30 = vadd.f32 %v1835_v27, %v1833_v26 }
 0x214   : > { %v1841_v33 = vpop.eup %1394  ;;  %v693_v32 = vmul.f32 1.442695, %v653_v29  ;;  %v695_v37 = vmul.f32 1.442695, %v654_v31  ;;  %742 = vadd.xlane.f32.xlu1 %v741_v30 }
 0x215   : > { %v1843_v39 = vpop.eup %1396  ;;  %v614_v43 = vpop.xlane.xlu1 %613 }
 0x216   : > { %1406 = vpow2.f32 %v693_v32  ;;  %v655_v45 = vsub.f32 %v1757_v36, %v614_v43  ;;  %v656_v49 = vsub.f32 %v1761_v38, %v614_v43  ;;  %v744_v34 = vadd.f32 %v1843_v39, %v1841_v33 }
 0x217   : > { %1408 = vpow2.f32 %v695_v37 }
 0x218   : > { %v1849_v35 = vpop.eup %1398  ;;  %v697_v51 = vmul.f32 1.442695, %v655_v45  ;;  %v699_v55 = vmul.f32 1.442695, %v656_v49  ;;  %745 = vadd.xlane.f32.xlu0 %v744_v34 }
 0x219   : > { %v1851_v57 = vpop.eup %1400  ;;  %v617_v61 = vpop.xlane.xlu1 %616 }
 0x21a   : > { %v1853_v63 = vpop.eup %1402  ;;  %1410 = vpow2.f32 %v697_v51  ;;  %v657_v3 = vsub.f32 %v1765_v40, %v617_v61  ;;  %v658_v36 = vsub.f32 %v1767_v41, %v617_v61  ;;  %v747_v38 = vadd.f32 %v1851_v57, %v1849_v35 }
 0x21b   : > { %v1859_v5 = vpop.eup %1404  ;;  %1412 = vpow2.f32 %v699_v55 }
 0x21c   : > { %v701_v6 = vmul.f32 1.442695, %v657_v3  ;;  %v703_v7 = vmul.f32 1.442695, %v658_v36  ;;  %748 = vadd.xlane.f32.xlu1 %v747_v38  ;;  %v750_v8 = vadd.f32 %v1859_v5, %v1853_v63 }
 0x21d   : > { %v620_v9 = vpop.xlane.xlu1 %619 }
 0x21e   : > { %1414 = vpow2.f32 %v701_v6  ;;  %v659_v10 = vsub.f32 %v1769_v42, %v620_v9  ;;  %v660_v40 = vsub.f32 %v1773_v44, %v620_v9  ;;  %751 = vadd.xlane.f32.xlu0 %v750_v8 }
 0x21f   : > { %1416 = vpow2.f32 %v703_v7 }
 0x220   : > { %v1865_v41 = vpop.eup %1406  ;;  %v705_v11 = vmul.f32 1.442695, %v659_v10  ;;  %v707_v12 = vmul.f32 1.442695, %v660_v40 }
 0x221   : > { %v1867_v13 = vpop.eup %1408  ;;  %v623_v14 = vpop.xlane.xlu1 %622 }
 0x222   : > { %1418 = vpow2.f32 %v705_v11  ;;  %v661_v15 = vsub.f32 %v1777_v46, %v623_v14  ;;  %v662_v16 = vsub.f32 %v1779_v47, %v623_v14  ;;  %v753_v17 = vadd.f32 %v1867_v13, %v1865_v41 }
 0x223   : > { %1420 = vpow2.f32 %v707_v12 }
 0x224   : > { %v1873_v42 = vpop.eup %1410  ;;  %v709_v44 = vmul.f32 1.442695, %v661_v15  ;;  %v711_v18 = vmul.f32 1.442695, %v662_v16  ;;  %754 = vadd.xlane.f32.xlu1 %v753_v17 }
 0x225   : > { %v1875_v19 = vpop.eup %1412  ;;  %v626_v20 = vpop.xlane.xlu1 %625 }
 0x226   : > { %1422 = vpow2.f32 %v709_v44  ;;  %v663_v21 = vsub.f32 %v1781_v48, %v626_v20  ;;  %v664_v22 = vsub.f32 %v1785_v50, %v626_v20  ;;  %v756_v46 = vadd.f32 %v1875_v19, %v1873_v42 }
 0x227   : > { %1424 = vpow2.f32 %v711_v18 }
 0x228   : > { %v1881_v47 = vpop.eup %1414  ;;  %v713_v23 = vmul.f32 1.442695, %v663_v21  ;;  %v715_v24 = vmul.f32 1.442695, %v664_v22  ;;  %757 = vadd.xlane.f32.xlu0 %v756_v46 }
 0x229   : > { %v1883_v25 = vpop.eup %1416  ;;  %v629_v28 = vpop.xlane.xlu1 %628 }
 0x22a   : > { %1426 = vpow2.f32 %v713_v23  ;;  %v665_v29 = vsub.f32 %v1789_v52, %v629_v28  ;;  %v666_v31 = vsub.f32 %v1791_v53, %v629_v28  ;;  %v759_v48 = vadd.f32 %v1883_v25, %v1881_v47 }
 0x22b   : > { %1428 = vpow2.f32 %v715_v24 }
 0x22c   : > { %v1889_v50 = vpop.eup %1418  ;;  %v717_v30 = vmul.f32 1.442695, %v665_v29  ;;  %v719_v32 = vmul.f32 1.442695, %v666_v31  ;;  %760 = vadd.xlane.f32.xlu1 %v759_v48 }
 0x22d   : > { %v1891_v37 = vpop.eup %1420  ;;  %v632_v43 = vpop.xlane.xlu1 %631 }
 0x22e   : > { %1430 = vpow2.f32 %v717_v30  ;;  %v667_v45 = vsub.f32 %v1793_v54, %v632_v43  ;;  %v668_v49 = vsub.f32 %v1797_v56, %v632_v43  ;;  %v762_v52 = vadd.f32 %v1891_v37, %v1889_v50 }
 0x22f   : > { %1432 = vpow2.f32 %v719_v32 }
 0x230   : > { %v1897_v53 = vpop.eup %1422  ;;  %v721_v34 = vmul.f32 1.442695, %v667_v45  ;;  %v723_v51 = vmul.f32 1.442695, %v668_v49  ;;  %763 = vadd.xlane.f32.xlu0 %v762_v52  ;;  %v1389_v49 = vld [vmem:[%s1957_s15 + $0x4] ss:$8 sps:$4 sm:$0xff]  }
 0x231   : > { %v1899_v55 = vpop.eup %1424  ;;  %v635_v61 = vpop.xlane.xlu1 %634  ;;  %993 = vmatprep.mubr.bf16.mxu1 %v1389_v49 }
 0x232   : > { %1434 = vpow2.f32 %v721_v34  ;;  %v669_v3 = vsub.f32 %v1801_v58, %v635_v61  ;;  %v670_v36 = vsub.f32 %v1803_v59, %v635_v61  ;;  %v765_v54 = vadd.f32 %v1899_v55, %v1897_v53 }
 0x233   : > { %1436 = vpow2.f32 %v723_v51  ;;  %v638_v56 = vpop.xlane.xlu0 %637 }
 0x234   : > { %v1905_v38 = vpop.eup %1426  ;;  %v725_v6 = vmul.f32 1.442695, %v669_v3  ;;  %v727_v7 = vmul.f32 1.442695, %v670_v36  ;;  %766 = vadd.xlane.f32.xlu1 %v765_v54  ;;  %v671_v8 = vsub.f32 %v1805_v60, %v638_v56  ;;  %v672_v9 = vsub.f32 %v1809_v62, %v638_v56 }
 0x235   : > { %v1909_v10 = vpop.eup %1428 }
 0x236   : > { %1438 = vpow2.f32 %v725_v6  ;;  %v729_v58 = vmul.f32 1.442695, %v671_v8  ;;  %v731_v40 = vmul.f32 1.442695, %v672_v9  ;;  %v768_v59 = vadd.f32 %v1909_v10, %v1905_v38 }
 0x237   : > { %1440 = vpow2.f32 %v727_v7 }
 0x238   : > { %v1913_v11 = vpop.eup %1430  ;;  %1442 = vpow2.f32 %v729_v58  ;;  %769 = vadd.xlane.f32.xlu0 %v768_v59 }
 0x239   : > { %v1915_v12 = vpop.eup %1432  ;;  %1444 = vpow2.f32 %v731_v40  ;;  %v641_v14 = vpop.xlane.xlu1 %640 }
 0x23a   : > { %v673_v60 = vsub.f32 %v1813_v0, %v641_v14  ;;  %v674_v62 = vsub.f32 %v1815_v1, %v641_v14  ;;  %v771_v15 = vadd.f32 %v1915_v12, %v1913_v11 }
 0x23b   : > { %v644_v16 = vpop.xlane.xlu0 %643 }
 0x23c   : > { %v1921_v17 = vpop.eup %1434  ;;  %v733_v44 = vmul.f32 1.442695, %v673_v60  ;;  %v735_v18 = vmul.f32 1.442695, %v674_v62  ;;  %772 = vadd.xlane.f32.xlu1 %v771_v15  ;;  %v675_v20 = vsub.f32 %v1817_v2, %v644_v16  ;;  %v676_v21 = vsub.f32 %v1821_v4, %v644_v16 }
 0x23d   : > { %v1925_v22 = vpop.eup %1436 }
 0x23e   : > { %1446 = vpow2.f32 %v733_v44  ;;  %v737_v46 = vmul.f32 1.442695, %v675_v20  ;;  %v739_v0 = vmul.f32 1.442695, %v676_v21  ;;  %v774_v1 = vadd.f32 %v1925_v22, %v1921_v17 }
 0x23f   : > { %1448 = vpow2.f32 %v735_v18 }
 0x240   : > { %v1929_v23 = vpop.eup %1438  ;;  %1450 = vpow2.f32 %v737_v46  ;;  %775 = vadd.xlane.f32.xlu0 %v774_v1 }
 0x241   : > { %v1931_v24 = vpop.eup %1440  ;;  %1452 = vpow2.f32 %v739_v0 }
 0x242   : > { %v1933_v2 = vpop.eup %1442  ;;  %v777_v4 = vadd.f32 %v1931_v24, %v1929_v23 }
 0x243   : > { %v1937_v28 = vpop.eup %1444 }
 0x244   : > { %778 = vadd.xlane.f32.xlu1 %v777_v4  ;;  %v780_v29 = vadd.f32 %v1937_v28, %v1933_v2 }
 0x246   : > { %781 = vadd.xlane.f32.xlu0 %v780_v29 }
 0x248   : > { %v1941_v31 = vpop.eup %1446 }
 0x249   : > { %v1943_v48 = vpop.eup %1448 }
 0x24a   : > { %v1945_v30 = vpop.eup %1450  ;;  %v783_v32 = vadd.f32 %v1943_v48, %v1941_v31 }
 0x24b   : > { %v1949_v43 = vpop.eup %1452 }
 0x24c   : > { %784 = vadd.xlane.f32.xlu1 %v783_v32  ;;  %v786_v45 = vadd.f32 %v1949_v43, %v1945_v30 }
 0x24e   : > { %787 = vadd.xlane.f32.xlu0 %v786_v45 }
 0x2a1   : > { %v743_v52 = vpop.xlane.xlu1 %742 }
 0x2a2   : > { %1454 = vrcp.f32 %v743_v52 }
 0x2a5   : > { %v746_v34 = vpop.xlane.xlu0 %745 }
 0x2a6   : > { %1456 = vrcp.f32 %v746_v34 }
 0x2a9   : > { %v749_v51 = vpop.xlane.xlu1 %748 }
 0x2aa   : > { %1458 = vrcp.f32 %v749_v51 }
 0x2ab   : > { %v752_v61 = vpop.xlane.xlu0 %751 }
 0x2ac   : > { %v1455_v3 = vpop.eup %1454  ;;  %1460 = vrcp.f32 %v752_v61 }
 0x2ad   : > { %v806_v36 = vmul.f32 %v1455_v3, %v1835_v27  ;;  %v805_v54 = vmul.f32 %v1455_v3, %v1833_v26 }
 0x2af   : > { %v1285_v56 = vpack.c.bf16 %v806_v36, %v805_v54 }
 0x2b0   : > { %v1457_v6 = vpop.eup %1456 }
 0x2b1   : > { %v755_v7 = vpop.xlane.xlu1 %754  ;;  %v808_v8 = vmul.f32 %v1457_v6, %v1843_v39  ;;  %v807_v9 = vmul.f32 %v1457_v6, %v1841_v33  ;;  %933 = vst [vmem:[%s1965_s9] sm:$0xff] %v1285_v56 }
 0x2b2   : > { %1462 = vrcp.f32 %v755_v7 }
 0x2b3   : > { %v838_v58 = vpack.c.bf16 %v808_v8, %v806_v36  ;;  %v837_v40 = vpack.c.bf16 %v807_v9, %v805_v54  ;;  %v1286_v59 = vpack.c.bf16 %v808_v8, %v807_v9 }
 0x2b4   : > { %v1459_v27 = vpop.eup %1458 }
 0x2b5   : > { %961 = vmatprep.subr.bf16.mxu1 %v838_v58  ;;  %v758_v26 = vpop.xlane.xlu0 %757  ;;  %934 = vst [vmem:[%s1965_s9 + $0x8] sm:$0xff] %v1286_v59  ;;  %v810_v14 = vmul.f32 %v1459_v27, %v1851_v57  ;;  %v809_v39 = vmul.f32 %v1459_v27, %v1849_v35 }
 0x2b6   : > { %v1461_v33 = vpop.eup %1460  ;;  %1464 = vrcp.f32 %v758_v26  ;;  %962 = vmatpush1.bf16.xpose.msra.mxu1 %v837_v40 }
 0x2b7   : > { %v812_v60 = vmul.f32 %v1461_v33, %v1859_v5  ;;  %v811_v62 = vmul.f32 %v1461_v33, %v1853_v63  ;;  %v1287_v15 = vpack.c.bf16 %v810_v14, %v809_v39 }
 0x2b9   : > { %v761_v16 = vpop.xlane.xlu1 %760  ;;  %v840_v44 = vpack.c.bf16 %v812_v60, %v810_v14  ;;  %v1288_v18 = vpack.c.bf16 %v812_v60, %v811_v62  ;;  %935 = vst [vmem:[%s1965_s9 + $0x10] sm:$0xff] %v1287_v15  ;;  %v839_v57 = vpack.c.bf16 %v811_v62, %v809_v39 }
 0x2ba   : > { %1466 = vrcp.f32 %v761_v16 }
 0x2bb   : > { %963 = vmatprep.subr.bf16.mxu1 %v840_v44  ;;  %936 = vst [vmem:[%s1965_s9 + $0x18] sm:$0xff] %v1288_v18 }
 0x2bc   : > { %v1463_v20 = vpop.eup %1462 }
 0x2bd   : > { %v764_v21 = vpop.xlane.xlu0 %763  ;;  %v814_v35 = vmul.f32 %v1463_v20, %v1867_v13  ;;  %v813_v46 = vmul.f32 %v1463_v20, %v1865_v41 }
 0x2be   : > { %1468 = vrcp.f32 %v764_v21  ;;  %964 = vmatpush1.bf16.xpose.msra.mxu1 %v839_v57 }
 0x2bf   : > { %v1289_v63 = vpack.c.bf16 %v814_v35, %v813_v46 }
 0x2c0   : > { %v1465_v5 = vpop.eup %1464 }
 0x2c1   : > { %v767_v0 = vpop.xlane.xlu1 %766  ;;  %v816_v1 = vmul.f32 %v1465_v5, %v1875_v19  ;;  %v815_v4 = vmul.f32 %v1465_v5, %v1873_v42  ;;  %937 = vst [vmem:[%s1965_s9 + $0x20] sm:$0xff] %v1289_v63 }
 0x2c2   : > { %1470 = vrcp.f32 %v767_v0 }
 0x2c3   : > { %v842_v29 = vpack.c.bf16 %v816_v1, %v814_v35  ;;  %v841_v32 = vpack.c.bf16 %v815_v4, %v813_v46  ;;  %v1290_v45 = vpack.c.bf16 %v816_v1, %v815_v4 }
 0x2c4   : > { %v1467_v49 = vpop.eup %1466 }
 0x2c5   : > { %965 = vmatprep.subr.bf16.mxu1 %v842_v29  ;;  %v770_v13 = vpop.xlane.xlu0 %769  ;;  %938 = vst [vmem:[%s1965_s9 + $0x28] sm:$0xff] %v1290_v45  ;;  %v818_v41 = vmul.f32 %v1467_v49, %v1883_v25  ;;  %v817_v52 = vmul.f32 %v1467_v49, %v1881_v47  ;;  %v1387_v29 = vld [vmem:[%s1957_s15] ss:$8 sps:$4 sm:$0xff]  }
 0x2c6   : > { %1472 = vrcp.f32 %v770_v13  ;;  %966 = vmatpush1.bf16.xpose.msra.mxu1 %v841_v32  ;;  %v950_v32 = vld [vmem:[%s348_s11 + $0x8] sm:$0xff] }
 0x2c7   : > { %v1291_v19 = vpack.c.bf16 %v818_v41, %v817_v52 }
 0x2c8   : > { %v1469_v34 = vpop.eup %1468 }
 0x2c9   : > { %v773_v42 = vpop.xlane.xlu1 %772  ;;  %v820_v51 = vmul.f32 %v1469_v34, %v1891_v37  ;;  %v819_v61 = vmul.f32 %v1469_v34, %v1889_v50  ;;  %939 = vst [vmem:[%s1965_s9 + $0x30] sm:$0xff] %v1291_v19 }
 0x2ca   : > { %1474 = vrcp.f32 %v773_v42 }
 0x2cb   : > { %v844_v3 = vpack.c.bf16 %v820_v51, %v818_v41  ;;  %v843_v36 = vpack.c.bf16 %v819_v61, %v817_v52  ;;  %v1292_v54 = vpack.c.bf16 %v820_v51, %v819_v61 }
 0x2cc   : > { %v1471_v56 = vpop.eup %1470 }
 0x2cd   : > { %967 = vmatprep.subr.bf16.mxu1 %v844_v3  ;;  %v776_v25 = vpop.xlane.xlu0 %775  ;;  %940 = vst [vmem:[%s1965_s9 + $0x38] sm:$0xff] %v1292_v54  ;;  %v822_v47 = vmul.f32 %v1471_v56, %v1899_v55  ;;  %v821_v6 = vmul.f32 %v1471_v56, %v1897_v53 }
 0x2ce   : > { %1476 = vrcp.f32 %v776_v25  ;;  %968 = vmatpush1.bf16.xpose.msra.mxu1 %v843_v36 }
 0x2cf   : > { %v1293_v37 = vpack.c.bf16 %v822_v47, %v821_v6 }
 0x2d0   : > { %v1473_v7 = vpop.eup %1472 }
 0x2d1   : > { %v779_v50 = vpop.xlane.xlu1 %778  ;;  %v824_v8 = vmul.f32 %v1473_v7, %v1909_v10  ;;  %v823_v9 = vmul.f32 %v1473_v7, %v1905_v38  ;;  %941 = vst [vmem:[%s1965_s9 + $0x40] sm:$0xff] %v1293_v37 }
 0x2d2   : > { %1478 = vrcp.f32 %v779_v50 }
 0x2d3   : > { %v782_v58 = vpop.xlane.xlu0 %781  ;;  %v846_v40 = vpack.c.bf16 %v824_v8, %v822_v47  ;;  %v845_v59 = vpack.c.bf16 %v823_v9, %v821_v6  ;;  %v1294_v27 = vpack.c.bf16 %v824_v8, %v823_v9 }
 0x2d4   : > { %v1475_v55 = vpop.eup %1474  ;;  %1480 = vrcp.f32 %v782_v58 }
 0x2d5   : > { %969 = vmatprep.subr.bf16.mxu1 %v846_v40  ;;  %942 = vst [vmem:[%s1965_s9 + $0x48] sm:$0xff] %v1294_v27  ;;  %v826_v53 = vmul.f32 %v1475_v55, %v1915_v12  ;;  %v825_v26 = vmul.f32 %v1475_v55, %v1913_v11 }
 0x2d6   : > { %970 = vmatpush1.bf16.xpose.msra.mxu1 %v845_v59 }
 0x2d7   : > { %v1295_v10 = vpack.c.bf16 %v826_v53, %v825_v26 }
 0x2d8   : > { %v1477_v14 = vpop.eup %1476 }
 0x2d9   : > { %v785_v38 = vpop.xlane.xlu1 %784  ;;  %v828_v39 = vmul.f32 %v1477_v14, %v1925_v22  ;;  %v827_v33 = vmul.f32 %v1477_v14, %v1921_v17  ;;  %943 = vst [vmem:[%s1965_s9 + $0x50] sm:$0xff] %v1295_v10 }
 0x2da   : > { %1482 = vrcp.f32 %v785_v38 }
 0x2db   : > { %v788_v60 = vpop.xlane.xlu0 %787  ;;  %v848_v62 = vpack.c.bf16 %v828_v39, %v826_v53  ;;  %v847_v15 = vpack.c.bf16 %v827_v33, %v825_v26  ;;  %v1296_v16 = vpack.c.bf16 %v828_v39, %v827_v33 }
 0x2dc   : > { %v1479_v12 = vpop.eup %1478  ;;  %1484 = vrcp.f32 %v788_v60 }
 0x2dd   : > { %971 = vmatprep.subr.bf16.mxu1 %v848_v62  ;;  %944 = vst [vmem:[%s1965_s9 + $0x58] sm:$0xff] %v1296_v16  ;;  %v830_v11 = vmul.f32 %v1479_v12, %v1931_v24  ;;  %v829_v44 = vmul.f32 %v1479_v12, %v1929_v23 }
 0x2de   : > { %v1481_v18 = vpop.eup %1480  ;;  %972 = vmatpush1.bf16.xpose.msra.mxu1 %v847_v15 }
 0x2df   : > { %v832_v17 = vmul.f32 %v1481_v18, %v1937_v28  ;;  %v831_v22 = vmul.f32 %v1481_v18, %v1933_v2  ;;  %v1297_v20 = vpack.c.bf16 %v830_v11, %v829_v44 }
 0x2e1   : > { %v850_v57 = vpack.c.bf16 %v832_v17, %v830_v11  ;;  %v1298_v21 = vpack.c.bf16 %v832_v17, %v831_v22  ;;  %945 = vst [vmem:[%s1965_s9 + $0x60] sm:$0xff] %v1297_v20  ;;  %v849_v46 = vpack.c.bf16 %v831_v22, %v829_v44 }
 0x2e3   : > { %973 = vmatprep.subr.bf16.mxu1 %v850_v57  ;;  %946 = vst [vmem:[%s1965_s9 + $0x68] sm:$0xff] %v1298_v21 }
 0x2e4   : > { %v1483_v35 = vpop.eup %1482 }
 0x2e5   : > { %v834_v24 = vmul.f32 %v1483_v35, %v1943_v48  ;;  %v833_v23 = vmul.f32 %v1483_v35, %v1941_v31  ;;  %v949_v31 = vld [vmem:[%s348_s11] sm:$0xff] }
 0x2e6   : > { %v1485_v63 = vpop.eup %1484  ;;  %974 = vmatpush1.bf16.xpose.msra.mxu1 %v849_v46 }
 0x2e7   : > { %v836_v2 = vmul.f32 %v1485_v63, %v1949_v43  ;;  %v835_v28 = vmul.f32 %v1485_v63, %v1945_v30  ;;  %v1299_v5 = vpack.c.bf16 %v834_v24, %v833_v23 }
 0x2e9   : > { %v852_v0 = vpack.c.bf16 %v836_v2, %v834_v24  ;;  %v1300_v1 = vpack.c.bf16 %v836_v2, %v835_v28  ;;  %947 = vst [vmem:[%s1965_s9 + $0x70] sm:$0xff] %v1299_v5  ;;  %v851_v4 = vpack.c.bf16 %v835_v28, %v833_v23 }
 0x2eb   : > { %975 = vmatprep.subr.bf16.mxu1 %v852_v0  ;;  %948 = vst [vmem:[%s1965_s9 + $0x78] sm:$0xff] %v1300_v1 }
 0x2ee   : > { %976 = vmatpush1.bf16.xpose.msra.mxu1 %v851_v4 }
 0x2f5   : > { %994 = vmatmul.mubr.bf16.vlgmr.msra.gmra.mrb[0].mxu1 %v1387_v29 }
 0x3c7   : > { %1015 = sbr.rel (!%p1676_p8) target bundleno = 982 (0x3d6), region = 119 }
 0x3c8   : > { %v995_v48 = vpop.f32.mrb[0].mxu1 }
 0x3c9   : > { %v996_v45 = vadd.f32 %v995_v48, %v949_v31  ;;  %v997_v43 = vpop.f32.mrb[1].mxu1 }
 0x3ca   : > { %v998_v49 = vpop.f32.mrb[2].mxu1 }
 0x3cb   : > { %1002 = vst [vmem:[%s383_s13] sm:$0xff] %v996_v45  ;;  %v999_v30 = vadd.f32 %v998_v49, %v950_v32  ;;  %v1000_v13 = vpop.f32.mrb[3].mxu1 }
 0x3cd   : > { %1003 = vst [vmem:[%s383_s13 + $0x8] sm:$0xff] %v999_v30 }
 0x3d2   : > { %v1049_v41 = vld [vmem:[%s383_s13] sm:$0xff] }
 0x3d3   : > { %1050 = vst [vmem:[%s1019_s30] sm:$0xff] %v1049_v41 }
 0x3d4   : > { %v1051_v52 = vld [vmem:[%s383_s13 + $0x8] sm:$0xff] }
 0x3d5   : > { %1052 = vst [vmem:[%s1019_s30 + $0x10] sm:$0xff] %v1051_v52 }
 0x3d6 PF: > { %s1301_s10 = sshll.u32 %s1564_s21, 5  ;;  %s1280_s11 = sshll.u32 %s1568_s22, 6 }
 0x3d7   : > { %s1065_s14 = sadd.s32 %s1301_s10, %s1280_s11  ;;  %s1068_s0 = sshll.u32 %s1965_s9, 4  ;;  %s2024_s0 = int_to_ptr.vmem [resolvable:$true] %s1068_s0 }
 0x3d8   : > { %s1281_s1 = sshll.u32 %s1065_s14, 6  ;;  %s1486_s26 = scalar_lea.vmem %s2024_s0, 2048 }
 0x3d9   : > { %s2029_s17 = scalar_lea.hbm %s2087_s5, %s1281_s1  ;;  %p1487_p2 = scmp.ne.s32.totalorder %s2024_s0, %s1486_s26 }
 0x3da   : > { %s1583_s21 = smov [#allocation5]  }
 0x3db   : > { %p1488_p3 = pnand %p1487_p2, %p1676_p8  ;;  %s1490_s22 = sshll.u32 %s1583_s21, 4  ;;  %s1491_s22 = int_to_ptr.vmem [resolvable:$false] %s1490_s22 }
 0x3dc   : > { %s1492_s9 = scalar_lea.vmem %s1491_s22, 4096  ;;  %p1493_p5 = scmp.lt.s32.totalorder %s2024_s0, %s1491_s22 }
 0x3dd   : > { %p1489_p4 = pneg %p1488_p3  ;;  %p1494_p6 = scmp.lt.s32.totalorder %s1492_s9, %s1486_s26 }
 0x3df   : > { %p1495_p7 = por %p1494_p6, %p1493_p5 }
 0x3e1   : > { %p1496_p10 = pnand %p1495_p7, %p1489_p4 }
 0x3e3   : > { %1499 = shalt.err (!%p1496_p10)
}
 0x3e4   : > { %s1500_s1 = scalar_lea.hbm %s2029_s17, 2048  ;;  %s1504_s15 = scalar_lea.hbm %s2087_s5, 8192 }
 0x3e5   : > { %p1501_p11 = scmp.ne.s32.totalorder %s2029_s17, %s1500_s1  ;;  %p1505_p0 = scmp.lt.u32.totalorder %s2029_s17, %s2087_s5 }
 0x3e6   : > { %p1506_p1 = scmp.lt.u32.totalorder %s1504_s15, %s1500_s1  ;;  %p1508_p3 = scmp.lt.u32.totalorder %s1500_s1, %s2029_s17 }
 0x3e7   : > { %p1502_p12 = pnand %p1501_p11, %p1676_p8 }
 0x3e8   : > { %p1507_p2 = por %p1506_p1, %p1505_p0 }
 0x3e9   : > { %p1503_p13 = pneg %p1502_p12 }
 0x3ea   : > { %p1509_p4 = por %p1508_p3, %p1507_p2 }
 0x3ec   : > { %p1510_p5 = pnand %p1509_p4, %p1503_p13 }
 0x3ee   : > { %1513 = shalt.err (!%p1510_p5)
}
 0x3ef   : > { %s1584_s11 = smov 128   ;;  %s1585_s13 = smov 8  }
 0x3f0   : > { %s2095_s16 = scalar_lea.sflag [#allocation6], %s1710_s6 }
 0x3f1   : > { %1306 = dma.vmem_to_hbm [thread:$0]  (%p1676_p8), %s2024_s0, 2048, %s2029_s17, %s2095_s16, %s1584_s11, %s1584_s11, %s1585_s13  }
 0x3f2 PF: > { %p1312_p6 = scmp.ge.s32.totalorder %s1580_s25, 2  ;;  %s1090_s26 = sand.u32 1, %s1552_s18  }
 0x3f3   : > { %s1091_s21 = scalar_lea.sflag [#allocation6], %s1090_s26 }
 0x3f4   : > { %p1309_p7 = pnand %p1312_p6, %p1680_p9 }
 0x3f6   : > { %1547 = dma.done.wait (!%p1309_p7), %s1091_s21, 2048  }
 0x3f7   : > { %1549 = vsyncadd (!%p1309_p7), %s1091_s21, 4294965248  ;;  %s19_s25 = sadd.s32 1, %s1580_s25   ;;  %s2096_s18 = smov %s1556_s19 }
 0x3f8   : > { %p16_p10 = scmp.ge.s32.totalorder %s19_s25, 6   ;;  %s2097_s19 = smov %s1560_s20 }
 0x3f9   : > { %s2098_s20 = smov %s1688_s12  ;;  %s2099_s21 = smov %s1572_s23 }
 0x3fa   : > { %s2100_s22 = smov %s1576_s24  ;;  %s2101_s23 = smov %s2104_s28 }
 0x3fb   : > { %s2102_s24 = smov %s2108_s29  ;;  %18 = sbr.rel (!%p16_p10) target bundleno = 8 (0x8), region = 219 }
 0x402   :  { %1096 = vsyncpa [#allocation6], 1 }
 0x403   :  { %1098 = vsyncpa [#allocation6 + $0x1], 1 }

</bundles_post_ra>
